<compile_context>
chip_gen: v7x
topology: tpu7x:2x2x1
jax: 0.10.0
libtpu: 0.0.40
codegen_flags: <defaults>
</compile_context>

<pallas_src>
import functools

import jax
import jax.numpy as jnp
from jax.experimental import pallas as pl
from jax.experimental.pallas import tpu as pltpu


# Static activation dispatch (replaces PyTorch's eval()-based activation_func).
ACTIVATIONS = {
    "tanh": jnp.tanh,
    "hardtanh": lambda x: jnp.clip(x, -1.0, 1.0),
    "softshrink": lambda x: jnp.where(x > 0.5, x - 0.5,
                                      jnp.where(x < -0.5, x + 0.5, 0.0)),
    "tanhshrink": lambda x: x - jnp.tanh(x),
    "leaky_relu": lambda x: jnp.where(x >= 0, x, 0.01 * x),
    "elu": lambda x: jnp.where(x > 0, x, jnp.expm1(x)),
}


def time_conv_kernel(w_ref, b_ref, x_ref, o_ref, *, K, act):
    """Fused 1xK conv (1 -> 1 channel) + bias + activation, one batch element.

    Lane-dense layout: time axis H on lanes, kernel axis on sublanes.
      w_ref : (1, K)        SMEM  conv weight (in/out channels are both 1)
      b_ref : (1, 1)        SMEM  conv bias
      x_ref : (1, W, H)     VMEM  one batch element, W = input width
      o_ref : (1, Wout, H)  VMEM  Wout = W - K + 1
    """
    wout = o_ref.shape[1]
    # Static unroll over the tiny kernel width (K == numFeatures, typically 4).
    acc = x_ref[:, 0:wout, :] * w_ref[0, 0]
    for f in range(1, K):
        acc = acc + x_ref[:, f:f + wout, :] * w_ref[0, f]
    o_ref[...] = act(acc + b_ref[0, 0])


def time_convolution_forward(x, weight, bias, activation="tanh"):
    """x: (B, 1, H, W) float32 (NCHW); weight: (1, 1, 1, K); bias: (1,).

    Returns (B, 1, 60, 10, 10), matching Time_Convolution.forward exactly.
    """
    B, C, H, W = x.shape
    assert C == 1, "Time_Convolution expects a single input channel"
    K = weight.shape[-1]
    Wout = W - K + 1
    assert Wout >= 1 and H * Wout == 6000, (H, W, K)

    # Single wrapper-side layout op: long time axis -> lanes, kernel axis ->
    # sublanes, so the kernel's output stores are lane-dense.
    x_t = jnp.transpose(x.reshape(B, H, W), (0, 2, 1)).astype(jnp.float32)  # (B, W, H)
    w2 = weight.reshape(1, K).astype(jnp.float32)
    b2 = bias.reshape(1, 1).astype(jnp.float32)

    y = pl.pallas_call(
        functools.partial(time_conv_kernel, K=K, act=ACTIVATIONS[activation]),
        out_shape=jax.ShapeDtypeStruct((B, Wout, H), jnp.float32),
        grid_spec=pltpu.PrefetchScalarGridSpec(
            num_scalar_prefetch=0,
            grid=(B,),                                              # batch-parallel
            in_specs=[
                pl.BlockSpec(memory_space=pltpu.MemorySpace.SMEM),  # weight (scalars)
                pl.BlockSpec(memory_space=pltpu.MemorySpace.SMEM),  # bias   (scalar)
                pl.BlockSpec((1, W, H), lambda b: (b, 0, 0)),       # x, one batch elem
            ],
            out_specs=pl.BlockSpec((1, Wout, H), lambda b: (b, 0, 0)),
        ),
        compiler_params=pltpu.CompilerParams(
            dimension_semantics=("parallel",)),                     # megacore / 2-TC v7x
    )(w2, b2, x_t)

    # PyTorch: conv output (B, 1, H, Wout) -> view(B, 1, 60, 10, 10).
    if Wout == 1:
        return y.reshape(B, 1, 60, 10, 10)
    return jnp.transpose(y, (0, 2, 1)).reshape(B, 1, 60, 10, 10)


if __name__ == "__main__":
    key = jax.random.PRNGKey(0)
    kx, kw, kb = jax.random.split(key, 3)

    B = 2
    NUM_FEATURES = 4          # 3 physical features + time channel
    H = 6000                  # conv output has 6000 elems -> view(B, 1, 60, 10, 10)
    W = NUM_FEATURES          # kernel (1, numFeatures) collapses width to 1

    # Deterministic synthetic input + PyTorch-style Conv2d init bounds.
    x = jax.random.normal(kx, (B, 1, H, W), jnp.float32)
    bound = 1.0 / (NUM_FEATURES ** 0.5)
    weight = jax.random.uniform(kw, (1, 1, 1, NUM_FEATURES), jnp.float32, -bound, bound)
    bias = jax.random.uniform(kb, (1,), jnp.float32, -bound, bound)

    out = time_convolution_forward(x, weight, bias, activation="tanh")
    out = jax.block_until_ready(out)

    assert out.shape == (B, 1, 60, 10, 10), out.shape
    assert bool(jnp.all(jnp.isfinite(out)))

    # Pure-JAX reference (the module's shapes force Wout == 1).
    ref = jnp.tanh(
        jnp.einsum("bhf,f->bh", x.reshape(B, H, NUM_FEATURES),
                   weight.reshape(NUM_FEATURES)) + bias[0]
    ).reshape(B, 1, 60, 10, 10)
    assert bool(jnp.allclose(out, ref, atol=1e-5, rtol=1e-5)), \
        float(jnp.max(jnp.abs(out - ref)))

    print("KERNEL_OK")
</pallas_src>

<mosaic_0001>
module attributes {stable_mosaic.version = 11 : i64} {
  func.func @time_conv_kernel(%arg0: i32, %arg1: memref<1x4xf32, #tpu.memory_space<smem>>, %arg2: memref<1x1xf32, #tpu.memory_space<smem>>, %arg3: memref<1x4x6000xf32, #tpu.memory_space<vmem>>, %arg4: memref<1x1x6000xf32, #tpu.memory_space<vmem>>) attributes {dimension_semantics = [#tpu.dimension_semantics<parallel>], iteration_bounds = array<i64: 2>, scalar_prefetch = 0 : i64, scratch_operands = 0 : i64, tpu.core_type = #tpu.core_type<tc>, window_params = [{transform_indices = @transform_0, window_bounds = array<i64: 1, 4>}, {transform_indices = @transform_1, window_bounds = array<i64: 1, 1>}, {transform_indices = @transform_2, window_bounds = array<i64: 1, 4, 6000>}, {transform_indices = @transform_3, window_bounds = array<i64: 1, 1, 6000>}]} {
    %c0 = arith.constant 0 : index
    %c0_0 = arith.constant 0 : index
    %c0_1 = arith.constant 0 : index
    %0 = vector.load %arg3[%c0, %c0_0, %c0_1] : memref<1x4x6000xf32, #tpu.memory_space<vmem>>, vector<1x1x6000xf32>
    %c0_2 = arith.constant 0 : index
    %c0_3 = arith.constant 0 : index
    %1 = memref.load %arg1[%c0_2, %c0_3] : memref<1x4xf32, #tpu.memory_space<smem>>
    %2 = vector.broadcast %1 : f32 to vector<1x1x6000xf32>
    %3 = arith.mulf %0, %2 : vector<1x1x6000xf32>
    %c0_4 = arith.constant 0 : index
    %c1 = arith.constant 1 : index
    %c0_5 = arith.constant 0 : index
    %4 = vector.load %arg3[%c0_4, %c1, %c0_5] : memref<1x4x6000xf32, #tpu.memory_space<vmem>>, vector<1x1x6000xf32>
    %c0_6 = arith.constant 0 : index
    %c1_7 = arith.constant 1 : index
    %5 = memref.load %arg1[%c0_6, %c1_7] : memref<1x4xf32, #tpu.memory_space<smem>>
    %6 = vector.broadcast %5 : f32 to vector<1x1x6000xf32>
    %7 = arith.mulf %4, %6 : vector<1x1x6000xf32>
    %8 = arith.addf %3, %7 : vector<1x1x6000xf32>
    %c0_8 = arith.constant 0 : index
    %c2 = arith.constant 2 : index
    %c0_9 = arith.constant 0 : index
    %9 = vector.load %arg3[%c0_8, %c2, %c0_9] : memref<1x4x6000xf32, #tpu.memory_space<vmem>>, vector<1x1x6000xf32>
    %c0_10 = arith.constant 0 : index
    %c2_11 = arith.constant 2 : index
    %10 = memref.load %arg1[%c0_10, %c2_11] : memref<1x4xf32, #tpu.memory_space<smem>>
    %11 = vector.broadcast %10 : f32 to vector<1x1x6000xf32>
    %12 = arith.mulf %9, %11 : vector<1x1x6000xf32>
    %13 = arith.addf %8, %12 : vector<1x1x6000xf32>
    %c0_12 = arith.constant 0 : index
    %c3 = arith.constant 3 : index
    %c0_13 = arith.constant 0 : index
    %14 = vector.load %arg3[%c0_12, %c3, %c0_13] : memref<1x4x6000xf32, #tpu.memory_space<vmem>>, vector<1x1x6000xf32>
    %c0_14 = arith.constant 0 : index
    %c3_15 = arith.constant 3 : index
    %15 = memref.load %arg1[%c0_14, %c3_15] : memref<1x4xf32, #tpu.memory_space<smem>>
    %16 = vector.broadcast %15 : f32 to vector<1x1x6000xf32>
    %17 = arith.mulf %14, %16 : vector<1x1x6000xf32>
    %18 = arith.addf %13, %17 : vector<1x1x6000xf32>
    %c0_16 = arith.constant 0 : index
    %c0_17 = arith.constant 0 : index
    %19 = memref.load %arg2[%c0_16, %c0_17] : memref<1x1xf32, #tpu.memory_space<smem>>
    %20 = vector.broadcast %19 : f32 to vector<1x1x6000xf32>
    %21 = arith.addf %18, %20 : vector<1x1x6000xf32>
    %22 = math.tanh %21 : vector<1x1x6000xf32>
    %c0_18 = arith.constant 0 : index
    %c0_19 = arith.constant 0 : index
    %c0_20 = arith.constant 0 : index
    %23 = vector.load %arg4[%c0_18, %c0_19, %c0_20] : memref<1x1x6000xf32, #tpu.memory_space<vmem>>, vector<1x1x6000xf32>
    tpu.vector_store %arg4[%c0_18, %c0_19, %c0_20], %22 {strides = array<i32>} : memref<1x1x6000xf32, #tpu.memory_space<vmem>>, vector<1x1x6000xf32>,
    return
  }
  func.func @transform_0(%arg0: i32) -> (i32, i32) {
    %c0_i32 = arith.constant 0 : i32
    %c0_i32_0 = arith.constant 0 : i32
    %c0_i32_1 = arith.constant 0 : i32
    return %c0_i32, %c0_i32_0 : i32, i32
  }
  func.func @transform_1(%arg0: i32) -> (i32, i32) {
    %c0_i32 = arith.constant 0 : i32
    %c0_i32_0 = arith.constant 0 : i32
    %c0_i32_1 = arith.constant 0 : i32
    return %c0_i32, %c0_i32_0 : i32, i32
  }
  func.func @transform_2(%arg0: i32) -> (i32, i32, i32) {
    %c0_i32 = arith.constant 0 : i32
    %c0_i32_0 = arith.constant 0 : i32
    %c0_i32_1 = arith.constant 0 : i32
    return %arg0, %c0_i32, %c0_i32_0 : i32, i32, i32
  }
  func.func @transform_3(%arg0: i32) -> (i32, i32, i32) {
    %c0_i32 = arith.constant 0 : i32
    %c0_i32_0 = arith.constant 0 : i32
    %c0_i32_1 = arith.constant 0 : i32
    return %arg0, %c0_i32, %c0_i32_0 : i32, i32, i32
  }
}

</mosaic_0001>

<bundles_post_ra>
// kernel: tpu_custom_call.1
= control target key start
LH: loop header
LB: loop body
LE: loop exit
PB: predicated region body
PF: predicated region fallthrough
CT: control target
= control target key end

     0   :  { %s892_s0 = inlined_call_operand.vmem [shape: f32[1,4], index: 0, kind: input, shape index: {}]   ;;  %s893_s1 = inlined_call_operand.<no memory space> [shape: f32[1,1], index: 1, kind: input, shape index: {}]   ;;  %s894_s2 = inlined_call_operand.hbm [shape: f32[2,4,6000], index: 2, kind: input, shape index: {}]   ;;  %s895_s3 = inlined_call_operand.hbm [shape: f32[2,1,6000], index: 3, kind: output, shape index: {}]  }
   0x1   :  { %8 = sst [smem:[#allocation2]] %s893_s1 }
   0x2   :  { %9 = vsyncpa [#allocation6], 0 }
   0x3   :  { %10 = vsyncpa [#allocation4], 0 }
   0x4   :  { %12 = vsyncpa [#allocation4 + $0x1], 0 }
   0x5   :  { %13 = vsyncpa [#allocation5], 0 }
   0x6   :  { %15 = vsyncpa [#allocation5 + $0x1], 0  ;;  %s673_s14 = smov 0   ;;  %s675_s15 = smov 0  }
   0x7   :  { %s677_s16 = smov 0   ;;  %s679_s17 = smov 0  }
   0x8 LB: > { %s694_s1 = sadd.s32 4294967295, %s645_s17   ;;  %s420_s18 = sadd.s32 4294967294, %s645_s17   ;;  %s645_s17 = sphi %s679_s17, %s916_s17   ;;  %s641_s16 = sphi %s677_s16, %s915_s16   ;;  %s637_s15 = sphi %s675_s15, %s914_s15   ;;  %s633_s14 = sphi %s673_s14, %s913_s14  }
   0x9   : > { %p83_p0 = scmp.ne.s32.totalorder %s637_s15, %s633_s14  ;;  %p896_p1 = scmp.eq.s32.totalorder %s694_s1, 0 }
   0xa   : > { %p113_p3 = scmp.eq.s32.totalorder %s420_s18, 1  ;;  %p421_p5 = scmp.ge.s32.totalorder %s645_s17, 1 }
   0xb   : > { %p703_p4 = por %p896_p1, %p83_p0  ;;  %p120_p7 = scmp.lt.s32.totalorder %s645_s17, 3 }
   0xc   : > { %p708_p6 = por %p113_p3, %p83_p0  ;;  %s133_s23 = sshll.u32 %s892_s0, 4  ;;  %s134_s23 = int_to_ptr.vmem [resolvable:$true] %s133_s23 }
   0xd   : > { %s899_s19 = scalar_select %p703_p4, 1, 0 }
   0xe   : > { %s900_s20 = scalar_select %p708_p6, 1, 0 }
   0xf   : > { %p716_p8 = pnand %p421_p5, %p120_p7  ;;  %s724_s25 = sadd.s32 1, %s645_s17  }
  0x10   : > { %s67_s27 = ssub.s32 %s645_s17, %s724_s25  ;;  %s70_s29 = sadd.s32 1, %s641_s16 }
  0x11   : > { %p469_p10 = pneg %p716_p8  ;;  %p734_p12 = scmp.eq.s32.totalorder %s67_s27, 0 }
  0x12   : > { %p77_p13 = scmp.ne.s32.totalorder %s641_s16, %s637_s15  ;;  %s530_s30 = scalar_lea.vmem %s134_s23, 16 }
  0x13   : > { %p728_p11 = pnand %p469_p10, %p896_p1  ;;  %p531_p0 = scmp.ne.s32.totalorder %s134_s23, %s530_s30 }
  0x14   : > { %p538_p9 = scmp.lt.s32.totalorder %s134_s23, %s134_s23  ;;  %p539_p2 = scmp.lt.s32.totalorder %s530_s30, %s530_s30 }
  0x15   : > { %p532_p3 = pneg %p728_p11 }
  0x16   : > { %p540_p10 = por %p539_p2, %p538_p9 }
  0x17   : > { %p533_p5 = pnand %p532_p3, %p531_p0 }
  0x19   : > { %p534_p7 = pneg %p533_p5 }
  0x1b   : > { %p541_p1 = pnand %p540_p10, %p534_p7 }
  0x1d   : > { %544 = shalt.err (!%p541_p1)
}
  0x1e   : > { %s647_s4 = smov [#allocation3]   ;;  %p78_p2 = scmp.eq.s32.totalorder %s645_s17, 0 }
  0x1f   : > { %472 = dma.vmem_to_smem (!%p728_p11), %s134_s23, 16, %s647_s4, [#allocation6]  }
  0x20   : > { %s748_s5 = scalar_select %p734_p12, %s641_s16, %s70_s29  }
  0x21   : > { %p904_p1 = scmp.eq.s32.totalorder %s694_s1, 1  ;;  %p482_p0 = scmp.lt.s32.totalorder %s645_s17, 2 }
  0x22   : > { %s147_s7 = sand.u32 1, %s641_s16   ;;  %p79_p3 = por %p78_p2, %p77_p13 }
  0x23   : > { %p756_p9 = por %p904_p1, %p77_p13  ;;  %s456_s8 = smul.u32 188, %s147_s7 }
  0x24   : > { %s457_s9 = smul.u32 3008, %s645_s17  ;;  %p766_p5 = pnand %p482_p0, %p79_p3 }
  0x25   : > { %s905_s6 = scalar_select %p756_p9, 1, 0 }
  0x26   : > { %s773_s13 = scalar_lea.hbm %s894_s2, %s457_s9  ;;  %s151_s18 = scalar_lea.vmem [#allocation7], %s456_s8 }
  0x27   : > { %s159_s21 = sshll.u32 %s151_s18, 4  ;;  %s148_s22 = scalar_lea.sflag [#allocation4], %s147_s7  ;;  %s775_s21 = int_to_ptr.vmem [resolvable:$true] %s159_s21 }
  0x28   : > { %s545_s23 = scalar_lea.hbm %s773_s13, 3008  ;;  %p547_p12 = pneg %p766_p5 }
  0x29   : > { %p546_p11 = scmp.ne.s32.totalorder %s773_s13, %s545_s23  ;;  %s550_s28 = scalar_lea.hbm %s894_s2, 6016 }
  0x2a   : > { %p551_p10 = scmp.lt.u32.totalorder %s773_s13, %s894_s2  ;;  %p552_p2 = scmp.lt.u32.totalorder %s550_s28, %s545_s23 }
  0x2b   : > { %p548_p13 = pnand %p547_p12, %p546_p11  ;;  %p554_p0 = scmp.lt.u32.totalorder %s545_s23, %s773_s13 }
  0x2c   : > { %p553_p1 = por %p552_p2, %p551_p10 }
  0x2d   : > { %p549_p7 = pneg %p548_p13 }
  0x2e   : > { %p555_p3 = por %p554_p0, %p553_p1 }
  0x30   : > { %p556_p6 = pnand %p555_p3, %p549_p7 }
  0x32   : > { %559 = shalt.err (!%p556_p6)
}
  0x33   : > { %s560_s4 = scalar_lea.vmem %s775_s21, 3008  ;;  %s648_s7 = smov [#allocation7]  }
  0x34   : > { %p561_p11 = scmp.ne.s32.totalorder %s775_s21, %s560_s4  ;;  %s565_s8 = sshll.u32 %s648_s7, 4  ;;  %s566_s8 = int_to_ptr.vmem [resolvable:$false] %s565_s8 }
  0x35   : > { %s567_s9 = scalar_lea.vmem %s566_s8, 6016  ;;  %p568_p4 = scmp.lt.s32.totalorder %s775_s21, %s566_s8 }
  0x36   : > { %p563_p13 = pnand %p561_p11, %p547_p12  ;;  %p569_p10 = scmp.lt.s32.totalorder %s567_s9, %s560_s4 }
  0x38   : > { %p564_p9 = pneg %p563_p13  ;;  %p570_p2 = por %p569_p10, %p568_p4 }
  0x3a   : > { %p571_p1 = pnand %p570_p2, %p564_p9 }
  0x3c   : > { %574 = shalt.err (!%p571_p1)
}
  0x3d   : > { %476 = dma.hbm_to_vmem [thread:$0]  (!%p766_p5), %s773_s13, 3008, %s775_s21, %s148_s22  }
  0x3e   : > { %168 = sbr.rel (%p716_p8) target bundleno = 128 (0x80), region = 32  ;;  %p907_p6 = scmp.eq.s32.totalorder (!%p716_p8), %s694_s1, 0 }
  0x45   : > { %620 = dma.done.wait (%p907_p6), [#allocation6], 16   ;;  %p908_p12 = pmov %p907_p6 }
  0x46   : > { %s809_s11 = sand.u32 1, %s637_s15   ;;  %p909_p4 = scmp.ne.s32.totalorder %s899_s19, 0 }
  0x47   : > { %622 = vsyncadd (%p908_p12), [#allocation6], 4294967280  ;;  %s458_s12 = smul.u32 188, %s809_s11  ;;  %s175_s10 = scalar_lea.sflag [#allocation4], %s809_s11 }
  0x49   : > { %s813_s18 = scalar_lea.vmem [#allocation7], %s458_s12 }
  0x4a   : > { %624 = dma.done.wait (%p909_p4), %s175_s10, 3008  }
  0x4b   : > { %626 = vsyncadd (%p909_p4), %s175_s10, 4294964288 }
  0x4c   : > { %183 = sfence }
  0x4d   : > { %s213_s24 = sld [smem:[#allocation3]]  ;;  %s438_s13 = sld [smem:[#allocation3 + $0x1]]  ;;  %v202_v0 = vld [vmem:[%s813_s18] ss:$4 sm:$0xff]  ;;  %v432_v1 = vld [vmem:[%s813_s18 + $0x1] ss:$4 sm:$0xff] }
  0x4e   : > { %s445_s21 = sld [smem:[#allocation3 + $0x2]]  ;;  %s452_s22 = sld [smem:[#allocation3 + $0x3]]  ;;  %v427_v2 = vld [vmem:[%s813_s18 + $0x20] ss:$4 sm:$0xff]  ;;  %v433_v3 = vld [vmem:[%s813_s18 + $0x21] ss:$4 sm:$0xff] }
  0x4f   : > { %s299_s23 = sld [smem:[#allocation2]]  ;;  %v428_v4 = vld [vmem:[%s813_s18 + $0x40] ss:$4 sm:$0xff]  ;;  %v434_v5 = vld [vmem:[%s813_s18 + $0x41] ss:$4 sm:$0xff]  ;;  %s459_s19 = smul.u32 47, %s809_s11 }
  0x50   : > { %v439_v7 = vld [vmem:[%s813_s18 + $0x2] ss:$4 sm:$0xff]  ;;  %v446_v11 = vld [vmem:[%s813_s18 + $0x3] ss:$4 sm:$0xff]  ;;  %v429_v21 = vld [vmem:[%s813_s18 + $0x60] ss:$4 sm:$0xff] }
  0x51   : > { %v440_v8 = vld [vmem:[%s813_s18 + $0x22] ss:$4 sm:$0xff]  ;;  %v447_v13 = vld [vmem:[%s813_s18 + $0x23] ss:$4 sm:$0xff]  ;;  %v435_v26 = vld [vmem:[%s813_s18 + $0x61] ss:$4 sm:$0xff] }
  0x52   : > { %v441_v19 = vld [vmem:[%s813_s18 + $0x42] ss:$4 sm:$0xff]  ;;  %v448_v20 = vld [vmem:[%s813_s18 + $0x43] ss:$4 sm:$0xff]  ;;  %v430_v33 = vld [vmem:[%s813_s18 + $0x80] ss:$4 sm:$0xff] }
  0x53   : > { %v214_v6 = vstv %s213_s24  ;;  %v234_v10 = vstv %s438_s13  ;;  %v442_v27 = vld [vmem:[%s813_s18 + $0x62] ss:$4 sm:$0xff]  ;;  %v449_v32 = vld [vmem:[%s813_s18 + $0x63] ss:$4 sm:$0xff]  ;;  %s201_s26 = scalar_lea.vmem [#allocation8], %s459_s19  ;;  %s460_s27 = smul.u32 752, %s694_s1 }
  0x54   : > { %v215_v9 = vmul.f32 %v214_v6, %v202_v0  ;;  %v216_v12 = vmul.f32 %v427_v2, %v214_v6  ;;  %v217_v14 = vmul.f32 %v428_v4, %v214_v6  ;;  %v235_v15 = vmul.f32 %v432_v1, %v234_v10  ;;  %v436_v34 = vld [vmem:[%s813_s18 + $0x81] ss:$4 sm:$0xff]  ;;  %v443_v39 = vld [vmem:[%s813_s18 + $0x82] ss:$4 sm:$0xff]  ;;  %v450_v44 = vld [vmem:[%s813_s18 + $0x83] ss:$4 sm:$0xff] }
  0x55   : > { %v260_v16 = vstv %s445_s21  ;;  %v236_v17 = vmul.f32 %v433_v3, %v234_v10  ;;  %v237_v18 = vmul.f32 %v434_v5, %v234_v10  ;;  %v286_v23 = vstv %s452_s22  ;;  %v431_v45 = vld [vmem:[%s813_s18 + $0xa0] ss:$4 sm:$0x7f]  ;;  %v437_v50 = vld [vmem:[%s813_s18 + $0xa1] ss:$4 sm:$0x7f]  ;;  %s848_s4 = scalar_lea.hbm %s895_s3, %s460_s27 }
  0x56   : > { %v261_v22 = vmul.f32 %v439_v7, %v260_v16  ;;  %v300_v24 = vstv %s299_s23  ;;  %v262_v25 = vmul.f32 %v440_v8, %v260_v16  ;;  %v241_v28 = vadd.f32 %v235_v15, %v215_v9  ;;  %v444_v55 = vld [vmem:[%s813_s18 + $0xa2] ss:$4 sm:$0x7f]  ;;  %v451_v60 = vld [vmem:[%s813_s18 + $0xa3] ss:$4 sm:$0x7f] }
  0x57   : > { %v287_v29 = vmul.f32 %v446_v11, %v286_v23  ;;  %v242_v30 = vadd.f32 %v236_v17, %v216_v12  ;;  %v288_v31 = vmul.f32 %v447_v13, %v286_v23  ;;  %v243_v35 = vadd.f32 %v237_v18, %v217_v14  ;;  %s338_s28 = sshll.u32 %s201_s26, 4  ;;  %s324_s7 = scalar_lea.sflag [#allocation5], %s809_s11  ;;  %s850_s28 = int_to_ptr.vmem [resolvable:$true] %s338_s28 }
  0x58   : > { %v263_v36 = vmul.f32 %v441_v19, %v260_v16  ;;  %v289_v37 = vmul.f32 %v448_v20, %v286_v23  ;;  %v218_v38 = vmul.f32 %v429_v21, %v214_v6  ;;  %v267_v40 = vadd.f32 %v261_v22, %v241_v28  ;;  %s575_s1 = scalar_lea.vmem %s850_s28, 752  ;;  %p910_p9 = scmp.ne.s32.totalorder %s905_s6, 0 }
  0x59   : > { %v268_v41 = vadd.f32 %v262_v25, %v242_v30  ;;  %v238_v42 = vmul.f32 %v435_v26, %v234_v10  ;;  %v264_v43 = vmul.f32 %v442_v27, %v260_v16  ;;  %v290_v47 = vmul.f32 %v449_v32, %v286_v23  ;;  %p576_p8 = scmp.ne.s32.totalorder %s850_s28, %s575_s1  ;;  %s649_s8 = smov [#allocation8]  }
  0x5a   : > { %v269_v46 = vadd.f32 %v263_v36, %v243_v35  ;;  %v219_v48 = vmul.f32 %v430_v33, %v214_v6  ;;  %v239_v49 = vmul.f32 %v436_v34, %v234_v10  ;;  %v293_v51 = vadd.f32 %v287_v29, %v267_v40  ;;  %s579_s9 = sshll.u32 %s649_s8, 4  ;;  %s580_s9 = int_to_ptr.vmem [resolvable:$false] %s579_s9 }
  0x5b   : > { %v294_v52 = vadd.f32 %v288_v31, %v268_v41  ;;  %v244_v53 = vadd.f32 %v238_v42, %v218_v38  ;;  %v265_v54 = vmul.f32 %v443_v39, %v260_v16  ;;  %v291_v58 = vmul.f32 %v450_v44, %v286_v23  ;;  %p577_p5 = pnand %p576_p8, %p910_p9  ;;  %s581_s12 = scalar_lea.vmem %s580_s9, 1504 }
  0x5c   : > { %v295_v56 = vadd.f32 %v289_v37, %v269_v46  ;;  %v245_v57 = vadd.f32 %v239_v49, %v219_v48  ;;  %v220_v59 = vmul.f32 %v431_v45, %v214_v6  ;;  %v301_v61 = vadd.f32 %v300_v24, %v293_v51  ;;  %p582_p0 = scmp.lt.s32.totalorder %s850_s28, %s580_s9  ;;  %p583_p3 = scmp.lt.s32.totalorder %s581_s12, %s575_s1 }
  0x5d   : > { %v302_v62 = vadd.f32 %v300_v24, %v294_v52  ;;  %v270_v63 = vadd.f32 %v264_v43, %v244_v53  ;;  %v240_v0 = vmul.f32 %v437_v50, %v234_v10  ;;  %v266_v3 = vmul.f32 %v444_v55, %v260_v16  ;;  %p578_p7 = pneg %p577_p5 }
  0x5e   : > { %v303_v1 = vadd.f32 %v300_v24, %v295_v56  ;;  %v271_v2 = vadd.f32 %v265_v54, %v245_v57  ;;  %518 = vtanh.f32 %v301_v61  ;;  %v292_v7 = vmul.f32 %v451_v60, %v286_v23  ;;  %p584_p11 = por %p583_p3, %p582_p0 }
  0x5f   : > { %v296_v4 = vadd.f32 %v290_v47, %v270_v63  ;;  %v246_v5 = vadd.f32 %v240_v0, %v220_v59  ;;  %520 = vtanh.f32 %v302_v62  ;;  %v318_v16 = vlaneseq }
  0x60   : > { %v297_v8 = vadd.f32 %v291_v58, %v271_v2  ;;  %522 = vtanh.f32 %v303_v1  ;;  %p585_p13 = pnand %p584_p11, %p578_p7 }
  0x61   : > { %v304_v9 = vadd.f32 %v300_v24, %v296_v4  ;;  %v272_v11 = vadd.f32 %v266_v3, %v246_v5  ;;  %vm320_vm0 = vcmp.lt.s32.totalorder %v318_v16, 880 }
  0x62   : > { %v305_v6 = vadd.f32 %v300_v24, %v297_v8 }
  0x63   : > { %524 = vtanh.f32 %v304_v9  ;;  %v298_v12 = vadd.f32 %v292_v7, %v272_v11 }
  0x64   : > { %526 = vtanh.f32 %v305_v6 }
  0x65   : > { %v306_v13 = vadd.f32 %v300_v24, %v298_v12 }
  0x67   : > { %528 = vtanh.f32 %v306_v13 }
  0x68   : > { %v519_v10 = vpop.eup %518 }
  0x69   : > { %v521_v14 = vpop.eup %520  ;;  %313 = vst [vmem:[%s201_s26] sm:$0xff] %v519_v10 }
  0x6a   : > { %v523_v15 = vpop.eup %522  ;;  %314 = vst [vmem:[%s201_s26 + $0x8] sm:$0xff] %v521_v14 }
  0x6b   : > { %315 = vst [vmem:[%s201_s26 + $0x10] sm:$0xff] %v523_v15 }
  0x6d   : > { %v525_v17 = vpop.eup %524 }
  0x6e   : > { %v527_v18 = vpop.eup %526  ;;  %316 = vst [vmem:[%s201_s26 + $0x18] sm:$0xff] %v525_v17 }
  0x6f   : > { %317 = vst [vmem:[%s201_s26 + $0x20] sm:$0xff] %v527_v18 }
  0x71   : > { %v529_v19 = vpop.eup %528 }
  0x72   : > { %322 = vst.msk [vmem:[%s201_s26 + $0x28] sm:$0x7f] %vm320_vm0, %v529_v19 }
  0x73   : > { %588 = shalt.err (!%p585_p13)
}
  0x74   : > { %s589_s11 = scalar_lea.hbm %s848_s4, 752  ;;  %s593_s24 = scalar_lea.hbm %s895_s3, 1504 }
  0x75   : > { %p590_p10 = scmp.ne.s32.totalorder %s848_s4, %s589_s11  ;;  %p594_p6 = scmp.lt.u32.totalorder %s848_s4, %s895_s3 }
  0x76   : > { %p595_p12 = scmp.lt.u32.totalorder %s593_s24, %s589_s11  ;;  %p597_p8 = scmp.lt.u32.totalorder %s589_s11, %s848_s4 }
  0x77   : > { %p591_p2 = pnand %p590_p10, %p910_p9 }
  0x78   : > { %p596_p4 = por %p595_p12, %p594_p6 }
  0x79   : > { %p592_p1 = pneg %p591_p2 }
  0x7a   : > { %p598_p5 = por %p597_p8, %p596_p4 }
  0x7c   : > { %p599_p7 = pnand %p598_p5, %p592_p1 }
  0x7e   : > { %602 = shalt.err (!%p599_p7)
}
  0x7f   : > { %467 = dma.vmem_to_hbm [thread:$0]  (%p910_p9), %s850_s28, 752, %s848_s4, %s324_s7  }
  0x80 PF: > { %s350_s22 = sand.u32 1, %s633_s14   ;;  %p911_p0 = scmp.ne.s32.totalorder %s900_s20, 0 }
  0x81   : > { %p912_p3 = scmp.ge.s32.totalorder %s645_s17, 2  ;;  %s351_s23 = scalar_lea.sflag [#allocation5], %s350_s22 }
  0x83   : > { %p478_p11 = pnand %p912_p3, %p911_p0 }
  0x85   : > { %628 = dma.done.wait (!%p478_p11), %s351_s23, 752  }
  0x86   : > { %630 = vsyncadd (!%p478_p11), %s351_s23, 4294966544  ;;  %p18_p13 = scmp.ge.s32.totalorder %s724_s25, 4   ;;  %s913_s14 = smov %s637_s15 }
  0x87   : > { %s914_s15 = smov %s641_s16  ;;  %s915_s16 = smov %s748_s5 }
  0x88   : > { %s916_s17 = smov %s724_s25  ;;  %20 = sbr.rel (!%p18_p13) target bundleno = 8 (0x8), region = 105 }
  0x8f   :  { %356 = vsyncpa [#allocation4], 1 }
  0x90   :  { %358 = vsyncpa [#allocation4 + $0x1], 1 }
  0x91   :  { %359 = vsyncpa [#allocation5], 1 }
  0x92   :  { %361 = vsyncpa [#allocation5 + $0x1], 1 }
  0x93   :  { %362 = vsyncpa [#allocation6], 1 }
  0x94   :  { %364 = vsyncpa [#allocation6 + $0x1], 1 }

</bundles_post_ra>
